<compile_context>
chip_gen: v7x
topology: tpu7x:2x2x1
jax: 0.10.0
libtpu: 0.0.40
codegen_flags: <defaults>
</compile_context>

<pallas_src>
import functools

import jax
import jax.numpy as jnp
from jax.experimental import pallas as pl
from jax.experimental.pallas import tpu as pltpu

TEMPERATURE = 0.07


def _nce_kernel(q_ref, t_ref, out_ref):
    """One (batch, q-tile) step: full-row cross-entropy for Tq query locations."""
    q = q_ref[0]                      # (C, Tq) channels-first, lane-dense
    t = t_ref[0]                      # (C, L)  VMEM-resident target slab
    tq = q.shape[-1]

    # Fold 1/temperature into the small q operand (C*Tq muls, not L*Tq).
    qs = q * (1.0 / TEMPERATURE)

    # Logits for this q-tile, transposed: s[k, i] = <t[:, k], q[:, i]> / temp.
    s = jax.lax.dot_general(
        t, qs, dimension_numbers=(((0,), (0,)), ((), ())),
        preferred_element_type=jnp.float32)            # (L, Tq) f32

    # Row-wise logsumexp over all L keys (sublane-axis reduce, lane-dense out).
    m = jnp.max(s, axis=0, keepdims=True)              # (1, Tq)
    l = jnp.sum(jnp.exp(s - m), axis=0, keepdims=True)  # (1, Tq)

    # Diagonal logits via an O(C*Tq) trace on the inputs (kept in f32).
    if tq % 128 == 0:
        off = pl.multiple_of(pl.program_id(1) * tq, 128)
    else:
        off = 0   # non-lane-aligned L always runs as a single q-tile
    t_diag = t_ref[0, :, pl.ds(off, tq)]               # (C, Tq)
    d = jnp.sum(qs.astype(jnp.float32) * t_diag.astype(jnp.float32),
                axis=0, keepdims=True)                 # (1, Tq)

    # Per-row cross-entropy, lane-dense store.
    out_ref[0] = m + jnp.log(l) - d


def _vmem_capacity_bytes():
    try:
        return int(pltpu.get_tpu_info().vmem_capacity_bytes)
    except Exception:
        return 64 * 1024 * 1024   # conservative (v7x per-core) fallback


def _pick_tile(C, L, B, itemsize, budget):
    """Largest lane-aligned q-tile whose per-step working set fits `budget`."""
    def working_set(tq):
        return (2 * C * L * itemsize      # double-buffered resident target slab
                + 2 * C * tq * itemsize   # double-buffered query tile
                + 2 * L * tq * 4          # f32 logits tile + exp() temporary
                + 2 * tq * 4)             # double-buffered output block

    if L % 128 != 0:
        # Single full-dim tile (BlockSpec full-dim exception); L is the
        # user-chosen num_locations and is small when it is not lane-aligned.
        # TODO(synk): add a k-tiled online-softmax fallback if a huge,
        # non-128-aligned L ever exceeds the VMEM budget.
        return L, 1

    for tq in (1024, 512, 256, 128):
        if L % tq:
            continue
        n = L // tq
        if B * n < 2 and tq > 128:
            continue   # keep >=2 parallel grid steps so both v7x cores get work
        if working_set(tq) <= budget:
            return tq, n
    return 128, L // 128   # smallest aligned tile; may spill only for extreme L


@functools.partial(jax.jit, static_argnames=("intraimage_num_locations",))
def intra_image_nce_loss(query, target, *, intraimage_num_locations):
    """query, target: (B, C, H, W). Returns scalar f32 loss."""
    B, C, H, W = query.shape
    HW = H * W
    L = min(HW, intraimage_num_locations)

    # Free reshape, stays channels-first.  The shared random permutation of the
    # PyTorch module leaves the loss unchanged, so the first L locations are
    # used directly.
    q = query.reshape(B, C, HW)
    t = target.reshape(B, C, HW)
    if L < HW and L % 128 != 0:
        # Only in this corner case do we materialise a slice: the BlockSpec
        # lane dim must be a multiple of 128 or equal the full array dim.
        q = q[:, :, :L]
        t = t[:, :, :L]

    cap = _vmem_capacity_bytes()
    vmem_limit = min(int(cap * 0.75), 96 * 1024 * 1024)
    Tq, n_q = _pick_tile(C, L, B, q.dtype.itemsize, budget=int(vmem_limit * 0.6))

    per_row = pl.pallas_call(
        _nce_kernel,
        out_shape=jax.ShapeDtypeStruct((B, 1, L), jnp.float32),
        grid_spec=pltpu.PrefetchScalarGridSpec(
            num_scalar_prefetch=0,
            grid=(B, n_q),
            in_specs=[
                # q: one (C, Tq) tile per grid step.
                pl.BlockSpec((1, C, Tq), lambda b, qi: (b, 0, qi)),
                # t: full-L slab, fetched once per batch, VMEM-resident.
                pl.BlockSpec((1, C, L), lambda b, qi: (b, 0, 0)),
            ],
            out_specs=pl.BlockSpec((1, 1, Tq), lambda b, qi: (b, 0, qi)),
        ),
        compiler_params=pltpu.CompilerParams(
            dimension_semantics=("parallel", "parallel"),
            vmem_limit_bytes=vmem_limit),
    )(q, t)

    return jnp.sum(per_row) / jnp.float32(B * L)


def _reference_loss(query, target, key, *, intraimage_num_locations):
    """Pure-JAX reference matching the PyTorch forward (with the permutation)."""
    B, C, H, W = query.shape
    L = min(H * W, intraimage_num_locations)
    perm = jax.random.permutation(key, L)
    q = query.reshape(B, C, H * W)[:, :, perm]
    t = target.reshape(B, C, H * W)[:, :, perm]
    sim = jnp.einsum("bcl,bcm->blm", q, t,
                     precision=jax.lax.Precision.HIGHEST) / TEMPERATURE
    sim = sim.reshape(B * L, L)
    labels = jnp.tile(jnp.arange(L), B)
    lse = jax.nn.logsumexp(sim, axis=-1)
    picked = sim[jnp.arange(B * L), labels]
    return jnp.mean(lse - picked)


def _make_inputs(key, B, C, H, W):
    k_q, k_n = jax.random.split(key)
    query = jax.random.normal(k_q, (B, C, H, W), dtype=jnp.float32)
    # Correlated target so the diagonal labels are meaningful (as in real use).
    target = 0.9 * query + 0.45 * jax.random.normal(k_n, (B, C, H, W),
                                                    dtype=jnp.float32)
    return query, target


if __name__ == "__main__":
    root = jax.random.PRNGKey(0)

    # Case 1: L < H*W, non-lane-aligned L -> single full-dim q-tile path.
    k_in, k_perm = jax.random.split(jax.random.fold_in(root, 1))
    query, target = _make_inputs(k_in, 2, 4, 16, 16)
    loss = jax.block_until_ready(
        intra_image_nce_loss(query, target, intraimage_num_locations=64))
    ref = _reference_loss(query, target, k_perm, intraimage_num_locations=64)
    assert jnp.allclose(loss, ref, rtol=5e-3, atol=5e-3), (loss, ref)

    # Case 2: L == H*W, lane-aligned, two 128-wide q-tiles (tiled diag path).
    k_in, k_perm = jax.random.split(jax.random.fold_in(root, 2))
    query, target = _make_inputs(k_in, 1, 8, 16, 16)
    loss = jax.block_until_ready(
        intra_image_nce_loss(query, target, intraimage_num_locations=512))
    ref = _reference_loss(query, target, k_perm, intraimage_num_locations=512)
    assert jnp.allclose(loss, ref, rtol=5e-3, atol=5e-3), (loss, ref)

    print("KERNEL_OK")
</pallas_src>

<mosaic_0001>
module attributes {stable_mosaic.version = 11 : i64} {
  func.func @_nce_kernel(%arg0: i32, %arg1: i32, %arg2: memref<1x4x64xf32, #tpu.memory_space<vmem>>, %arg3: memref<1x4x64xf32, #tpu.memory_space<vmem>>, %arg4: memref<1x1x64xf32, #tpu.memory_space<vmem>>) attributes {dimension_semantics = [#tpu.dimension_semantics<parallel>, #tpu.dimension_semantics<parallel>], iteration_bounds = array<i64: 2, 1>, scalar_prefetch = 0 : i64, scratch_operands = 0 : i64, tpu.core_type = #tpu.core_type<tc>, window_params = [{transform_indices = @transform_0, window_bounds = array<i64: 1, 4, 64>}, {transform_indices = @transform_1, window_bounds = array<i64: 1, 4, 64>}, {transform_indices = @transform_2, window_bounds = array<i64: 1, 1, 64>}]} {
    %c0 = arith.constant 0 : index
    %c0_0 = arith.constant 0 : index
    %c0_1 = arith.constant 0 : index
    %0 = vector.load %arg2[%c0, %c0_0, %c0_1] : memref<1x4x64xf32, #tpu.memory_space<vmem>>, vector<1x4x64xf32>
    %1 = vector.shape_cast %0 : vector<1x4x64xf32> to vector<4x64xf32>
    %c0_2 = arith.constant 0 : index
    %c0_3 = arith.constant 0 : index
    %c0_4 = arith.constant 0 : index
    %2 = vector.load %arg3[%c0_2, %c0_3, %c0_4] : memref<1x4x64xf32, #tpu.memory_space<vmem>>, vector<1x4x64xf32>
    %3 = vector.shape_cast %2 : vector<1x4x64xf32> to vector<4x64xf32>
    %cst = arith.constant 14.2857141 : f32
    %4 = vector.broadcast %cst : f32 to vector<4x64xf32>
    %5 = arith.mulf %1, %4 : vector<4x64xf32>
    %cst_5 = arith.constant dense<0.000000e+00> : vector<64x64xf32>
    %6 = tpu.matmul %3, %5, %cst_5 {dimension_numbers = #tpu.dot_dimension_numbers<[0], [0], [1], [1], [0, 1, 1, 1], [], []>} : vector<4x64xf32>, vector<4x64xf32>, vector<64x64xf32> -> vector<64x64xf32>
    %cst_6 = arith.constant dense<0xFF800000> : vector<64xf32>
    %7 = vector.multi_reduction <maximumf>, %6, %cst_6 [0] : vector<64x64xf32> to vector<64xf32>
    %8 = vector.shape_cast %7 : vector<64xf32> to vector<1x64xf32>
    %9 = vector.broadcast %8 : vector<1x64xf32> to vector<64x64xf32>
    %10 = arith.subf %6, %9 : vector<64x64xf32>
    %11 = math.exp %10 : vector<64x64xf32>
    %cst_7 = arith.constant dense<0.000000e+00> : vector<64xf32>
    %12 = vector.multi_reduction <add>, %11, %cst_7 [0] : vector<64x64xf32> to vector<64xf32>
    %13 = vector.shape_cast %12 : vector<64xf32> to vector<1x64xf32>
    %c0_8 = arith.constant 0 : index
    %c0_9 = arith.constant 0 : index
    %c0_10 = arith.constant 0 : index
    %14 = vector.load %arg3[%c0_8, %c0_9, %c0_10] : memref<1x4x64xf32, #tpu.memory_space<vmem>>, vector<1x4x64xf32>
    %15 = vector.shape_cast %14 : vector<1x4x64xf32> to vector<4x64xf32>
    %16 = arith.mulf %5, %15 : vector<4x64xf32>
    %cst_11 = arith.constant dense<0.000000e+00> : vector<64xf32>
    %17 = vector.multi_reduction <add>, %16, %cst_11 [0] : vector<4x64xf32> to vector<64xf32>
    %18 = vector.shape_cast %17 : vector<64xf32> to vector<1x64xf32>
    %19 = math.log %13 : vector<1x64xf32>
    %20 = arith.addf %8, %19 : vector<1x64xf32>
    %21 = arith.subf %20, %18 : vector<1x64xf32>
    %c0_12 = arith.constant 0 : index
    %c0_13 = arith.constant 0 : index
    %c0_14 = arith.constant 0 : index
    %22 = vector.load %arg4[%c0_12, %c0_13, %c0_14] : memref<1x1x64xf32, #tpu.memory_space<vmem>>, vector<1x1x64xf32>
    %23 = vector.shape_cast %22 : vector<1x1x64xf32> to vector<1x64xf32>
    %24 = vector.shape_cast %21 : vector<1x64xf32> to vector<1x1x64xf32>
    tpu.vector_store %arg4[%c0_12, %c0_13, %c0_14], %24 {strides = array<i32>} : memref<1x1x64xf32, #tpu.memory_space<vmem>>, vector<1x1x64xf32>,
    return
  }
  func.func @transform_0(%arg0: i32, %arg1: i32) -> (i32, i32, i32) {
    %c0_i32 = arith.constant 0 : i32
    %c0_i32_0 = arith.constant 0 : i32
    return %arg0, %c0_i32, %arg1 : i32, i32, i32
  }
  func.func @transform_1(%arg0: i32, %arg1: i32) -> (i32, i32, i32) {
    %c0_i32 = arith.constant 0 : i32
    %c0_i32_0 = arith.constant 0 : i32
    %c0_i32_1 = arith.constant 0 : i32
    return %arg0, %c0_i32, %c0_i32_0 : i32, i32, i32
  }
  func.func @transform_2(%arg0: i32, %arg1: i32) -> (i32, i32, i32) {
    %c0_i32 = arith.constant 0 : i32
    %c0_i32_0 = arith.constant 0 : i32
    return %arg0, %c0_i32, %arg1 : i32, i32, i32
  }
}

</mosaic_0001>

<bundles_post_ra>
// kernel: intra_image_nce_loss.1
= control target key start
LH: loop header
LB: loop body
LE: loop exit
PB: predicated region body
PF: predicated region fallthrough
CT: control target
= control target key end

     0   :  { %s641_s9 = smov 0   ;;  %s643_s10 = smov 0   ;;  %s719_s0 = inlined_call_operand.vmem [shape: f32[2,4,64], index: 0, kind: input, shape index: {}]   ;;  %s720_s1 = inlined_call_operand.vmem [shape: f32[2,4,64], index: 1, kind: input, shape index: {}]   ;;  %s721_s2 = inlined_call_operand.vmem [shape: f32[2,1,64], index: 2, kind: output, shape index: {}]  }
   0x1   :  { %s645_s11 = smov 0  }
   0x2 LB: > { %s24_s12 = sadd.s32 1, %s620_s10  ;;  %p520_p0 = scmp.ge.s32.totalorder %s624_s11, 1  ;;  %s624_s11 = sphi %s645_s11, %s12_s11   ;;  %s620_s10 = sphi %s643_s10, %s723_s10   ;;  %s616_s9 = sphi %s641_s9, %s722_s9  }
   0x3   : > { %p26_p1 = scmp.ge.s32.totalorder %s24_s12, 2  ;;  %p139_p2 = scmp.lt.s32.totalorder %s624_s11, 3 }
   0x5   : > { %s725_s12 = smov (%p26_p1, %s24_s12), 0  ;;  %p140_p3 = pnand %p520_p0, %p139_p2 }
   0x6   : > { %p168_p4 = scmp.lt.s32.totalorder (!%p140_p3), %s616_s9, 1  ;;  %vm245_vm0 = vcmask (!%p140_p3), 1043456   ;;  %vm220_vm1 = vcmask (!%p140_p3), 31744   ;;  %vm354_vm2 = vcmask (!%p140_p3), 523264   ;;  %vm422_vm3 = vcmask (!%p140_p3), 519168  }
   0x7   : > { %143 = sbr.rel (%p140_p3) target bundleno = 468 (0x1d4), region = 28  ;;  %vm434_vm4 = vcmask (!%p140_p3), 516096  }
   0xe   : > { %s727_s9 = smov (!%p168_p4, %s616_s9), 1 }
   0xf   : > { %s521_s13 = sshll.u32 %s727_s9, 2  ;;  %s184_s22 = scalar_lea.vmem %s721_s2, %s727_s9 }
  0x10   : > { %s178_s16 = scalar_lea.vmem %s720_s1, %s521_s13  ;;  %s174_s19 = scalar_lea.vmem %s719_s0, %s521_s13 }
  0x11   : > { %v186_v0 = vld [vmem:[%s178_s16] sm:$0xf] }
  0x12   : > { %v185_v1 = vld [vmem:[%s174_s19] sm:$0xf]  ;;  %188 = vxpose.xlu0.b32.start.end [1/1] (short) (narrow) %v186_v0, 64 }
  0x13   : > { %v187_v2 = vmul.f32 14.285714, %v185_v1 }
  0x15   : > { %v668_v3 = vmul.f32 %v187_v2, %v186_v0  ;;  %543 = vmatprep.subr.msk.mxu0 %vm245_vm0, %v187_v2  ;;  %557 = vmatprep.subr.msk.mxu1 %vm245_vm0, %v187_v2 }
  0x16   : > { %544 = vmatpush3.msk.msra.mxu0 %vm245_vm0, %v187_v2  ;;  %558 = vmatpush3.msk.msra.mxu1 %vm245_vm0, %v187_v2 }
  0x92   : > { %v204_v4 = vpop.trf.xlu0 }
  0x93   : > { %545 = vmatprep.mubr.msk.f32.mxu0 %vm220_vm1, %v204_v4 }
  0x96   : > { %v205_v5 = vpop.trf.xlu0 }
  0x97   : > { %546 = vmatmul.mubr.msk.f32.vlgmr.msra.gmra.mrb[0].mxu0 %vm220_vm1, %v205_v5 }
  0x9a   : > { %v206_v6 = vpop.trf.xlu0 }
  0x9b   : > { %548 = vmatprep.mubr.msk.f32.mxu0 %vm220_vm1, %v206_v6 }
  0x9e   : > { %v207_v7 = vpop.trf.xlu0 }
  0x9f   : > { %549 = vmatmul.mubr.msk.f32.gmra.mrb[2].mxu0 %vm220_vm1, %v207_v7 }
  0xa2   : > { %v208_v8 = vpop.trf.xlu0 }
  0xa3   : > { %551 = vmatprep.mubr.msk.f32.mxu1 %vm220_vm1, %v208_v8 }
  0xa6   : > { %v209_v9 = vpop.trf.xlu0 }
  0xa7   : > { %552 = vmatmul.mubr.msk.f32.vlgmr.msra.gmra.mrb[0].mxu1 %vm220_vm1, %v209_v9 }
  0xaa   : > { %v210_v10 = vpop.trf.xlu0 }
  0xab   : > { %554 = vmatprep.mubr.msk.f32.mxu1 %vm220_vm1, %v210_v10 }
  0xae   : > { %v211_v11 = vpop.trf.xlu0 }
  0xaf   : > { %555 = vmatmul.mubr.msk.f32.gmra.mrb[2].mxu1 %vm220_vm1, %v211_v11 }
 0x16a   : > { %v547_v12 = vpop.f32.mrb[0].mxu0 }
 0x16b   : > { %v315_v13 = vpop.f32.mrb[1].mxu0  ;;  %v356_v17 = vsel %vm354_vm2, %v547_v12, -inf }
 0x16c   : > { %v355_v20 = vsel %vm354_vm2, %v315_v13, -inf }
 0x172   : > { %v550_v14 = vpop.f32.mrb[2].mxu0 }
 0x173   : > { %v325_v15 = vpop.f32.mrb[3].mxu0  ;;  %v358_v26 = vsel %vm354_vm2, %v550_v14, -inf }
 0x174   : > { %v357_v29 = vsel %vm354_vm2, %v325_v15, -inf }
 0x17a   : > { %v553_v16 = vpop.f32.mrb[0].mxu1 }
 0x17b   : > { %v361_v18 = vsel %vm354_vm2, %v553_v16, -inf  ;;  %v335_v19 = vpop.f32.mrb[1].mxu1 }
 0x17c   : > { %v362_v21 = vmax.f32 %v356_v17, %v361_v18  ;;  %v359_v22 = vsel %vm354_vm2, %v335_v19, -inf  ;;  %v423_v17 = vsel %vm422_vm3, %v668_v3, 0.0 }
 0x17d   : > { %v360_v23 = vmax.f32 %v355_v20, %v359_v22  ;;  %v424_v20 = vrot.slane %v423_v17, 4 }
 0x17f   : > { %v367_v24 = vmax.f32 %v360_v23, %v362_v21  ;;  %v425_v23 = vadd.f32 %v424_v20, %v423_v17 }
 0x182   : > { %v556_v25 = vpop.f32.mrb[2].mxu1 }
 0x183   : > { %v365_v27 = vsel %vm354_vm2, %v556_v25, -inf  ;;  %v345_v28 = vpop.f32.mrb[3].mxu1 }
 0x184   : > { %v366_v30 = vmax.f32 %v358_v26, %v365_v27  ;;  %v363_v31 = vsel %vm354_vm2, %v345_v28, -inf  ;;  %v426_v26 = vrot.slane %v425_v23, 2 }
 0x185   : > { %v364_v32 = vmax.f32 %v357_v29, %v363_v31 }
 0x186   : > { %v427_v27 = vadd.f32 %v426_v26, %v425_v23 }
 0x187   : > { %v368_v33 = vmax.f32 %v364_v32, %v366_v30 }
 0x189   : > { %v369_v34 = vmax.f32 %v367_v24, %v368_v33 }
 0x18b   : > { %v370_v35 = vrot.slane %v369_v34, 4 }
 0x18d   : > { %v371_v36 = vmax.f32 %v369_v34, %v370_v35 }
 0x18f   : > { %v372_v37 = vrot.slane %v371_v36, 2 }
 0x191   : > { %v373_v38 = vmax.f32 %v371_v36, %v372_v37 }
 0x193   : > { %v374_v39 = vrot.slane %v373_v38, 1 }
 0x195   : > { %v686_v40 = vmax.f32 %v373_v38, %v374_v39 }
 0x197   : > { %v376_v41 = vsub.f32 %v315_v13, %v686_v40  ;;  %v377_v42 = vsub.f32 %v547_v12, %v686_v40  ;;  %v378_v43 = vsub.f32 %v325_v15, %v686_v40  ;;  %v379_v44 = vsub.f32 %v550_v14, %v686_v40 }
 0x198   : > { %v380_v45 = vsub.f32 %v335_v19, %v686_v40  ;;  %v381_v46 = vsub.f32 %v553_v16, %v686_v40  ;;  %v382_v47 = vsub.f32 %v345_v28, %v686_v40  ;;  %v383_v48 = vsub.f32 %v556_v25, %v686_v40 }
 0x199   : > { %v384_v49 = vmul.f32 1.442695, %v376_v41  ;;  %v386_v50 = vmul.f32 1.442695, %v377_v42  ;;  %v388_v51 = vmul.f32 1.442695, %v378_v43 }
 0x19a   : > { %v390_v52 = vmul.f32 1.442695, %v379_v44  ;;  %v392_v53 = vmul.f32 1.442695, %v380_v45  ;;  %v394_v54 = vmul.f32 1.442695, %v381_v46 }
 0x19b   : > { %584 = vpow2.f32 %v384_v49  ;;  %v396_v55 = vmul.f32 1.442695, %v382_v47  ;;  %v398_v56 = vmul.f32 1.442695, %v383_v48  ;;  %v428_v28 = vrot.slane %v427_v27, 1 }
 0x19c   : > { %586 = vpow2.f32 %v386_v50 }
 0x19d   : > { %588 = vpow2.f32 %v388_v51  ;;  %v429_v30 = vadd.f32 %v428_v28, %v427_v27 }
 0x19e   : > { %590 = vpow2.f32 %v390_v52 }
 0x19f   : > { %592 = vpow2.f32 %v392_v53 }
 0x1a0   : > { %594 = vpow2.f32 %v394_v54 }
 0x1a1   : > { %596 = vpow2.f32 %v396_v55 }
 0x1a2   : > { %598 = vpow2.f32 %v398_v56 }
 0x1a5   : > { %v585_v57 = vpop.eup %584 }
 0x1a6   : > { %v587_v58 = vpop.eup %586  ;;  %v400_v59 = vsel %vm354_vm2, %v585_v57, 0.0 }
 0x1a7   : > { %v589_v60 = vpop.eup %588  ;;  %v401_v61 = vsel %vm354_vm2, %v587_v58, 0.0 }
 0x1a8   : > { %v591_v62 = vpop.eup %590  ;;  %v402_v63 = vadd.f32 %v401_v61, %v400_v59  ;;  %v403_v0 = vsel %vm354_vm2, %v589_v60, 0.0 }
 0x1a9   : > { %v593_v1 = vpop.eup %592  ;;  %v405_v4 = vsel %vm354_vm2, %v591_v62, 0.0 }
 0x1aa   : > { %v404_v2 = vadd.f32 %v403_v0, %v402_v63  ;;  %v595_v5 = vpop.eup %594  ;;  %v407_v7 = vsel %vm354_vm2, %v593_v1, 0.0 }
 0x1ab   : > { %v597_v8 = vpop.eup %596  ;;  %v409_v10 = vsel %vm354_vm2, %v595_v5, 0.0 }
 0x1ac   : > { %v406_v6 = vadd.f32 %v405_v4, %v404_v2  ;;  %v599_v11 = vpop.eup %598  ;;  %v411_v13 = vsel %vm354_vm2, %v597_v8, 0.0 }
 0x1ad   : > { %v413_v15 = vsel %vm354_vm2, %v599_v11, 0.0 }
 0x1ae   : > { %v408_v9 = vadd.f32 %v407_v7, %v406_v6 }
 0x1b0   : > { %v410_v12 = vadd.f32 %v409_v10, %v408_v9 }
 0x1b2   : > { %v412_v14 = vadd.f32 %v411_v13, %v410_v12 }
 0x1b4   : > { %v414_v16 = vadd.f32 %v413_v15, %v412_v14 }
 0x1b6   : > { %v415_v18 = vrot.slane %v414_v16, 4 }
 0x1b8   : > { %v416_v19 = vadd.f32 %v415_v18, %v414_v16 }
 0x1ba   : > { %v417_v21 = vrot.slane %v416_v19, 2 }
 0x1bc   : > { %v418_v22 = vadd.f32 %v417_v21, %v416_v19 }
 0x1be   : > { %v419_v24 = vrot.slane %v418_v22, 1 }
 0x1c0   : > { %v420_v25 = vadd.f32 %v419_v24, %v418_v22 }
 0x1c2   : > { %600 = vlog2.f32 %v420_v25 }
 0x1cc   : > { %v601_v29 = vpop.eup %600 }
 0x1cd   : > { %v431_v31 = vmul.f32 0.6931472, %v601_v29 }
 0x1cf   : > { %v432_v32 = vadd.f32 %v431_v31, %v686_v40 }
 0x1d1   : > { %v433_v3 = vsub.f32 %v432_v32, %v429_v30 }
 0x1d3   : > { %435 = vst.msk [vmem:[%s184_s22] sm:$0x1] %vm434_vm4, %v433_v3 }
 0x1d4 PF: > { %s12_s11 = sadd.s32 1, %s624_s11   ;;  %s722_s9 = smov %s620_s10 }
 0x1d5   : > { %p9_p5 = scmp.ge.s32.totalorder %s12_s11, 4   ;;  %s723_s10 = smov %s725_s12 }
 0x1d7   :  { %11 = sbr.rel (!%p9_p5) target bundleno = 2 (0x2), region = 61 }

</bundles_post_ra>
